<compile_context>
chip_gen: v7x
topology: tpu7x:2x2x1
jax: 0.10.0
libtpu: 0.0.40
codegen_flags: <defaults>
</compile_context>

<pallas_src>
import jax
import jax.numpy as jnp
from jax.experimental import pallas as pl
from jax.experimental.pallas import tpu as pltpu


def _round_up(x, m):
    return ((x + m - 1) // m) * m


# ----------------------------- Pallas kernels --------------------------------
def _linear_kernel_fused(x_ref, w_ref, b_ref, o_ref):
    """Whole K reduction resident: one MXU pass straight into the output tile."""
    o_ref[...] = (
        jnp.dot(x_ref[...], w_ref[...], preferred_element_type=jnp.float32)
        + b_ref[...].astype(jnp.float32)
    ).astype(o_ref.dtype)


def _linear_kernel_acc(x_ref, w_ref, b_ref, o_ref, acc_ref):
    """K tiled over grid axis 2; f32 accumulator, bias folded into the init."""
    k = pl.program_id(2)

    @pl.when(k == 0)
    def _():
        acc_ref[...] = jnp.broadcast_to(
            b_ref[...].astype(jnp.float32), acc_ref.shape
        )

    acc_ref[...] += jnp.dot(
        x_ref[...], w_ref[...], preferred_element_type=jnp.float32
    )

    @pl.when(k == pl.num_programs(2) - 1)
    def _():
        o_ref[...] = acc_ref[...].astype(o_ref.dtype)


def _choose_tiles(M, K, N):
    """Pick (tm, tn, tk) tiles aligned to MXU / (8,128) layout constraints."""
    # Row tile: big tiles amortize the ~0.35us/step overhead and fill the MXU;
    # keep >= 2 grid steps for large M so both v7x TensorCores get work.  Tiny
    # problems get one sublane-aligned tile instead of being over-padded.
    tm = 256 if M >= 512 else _round_up(M, 8)
    # N tile: lane-dense (multiple of 128) -> unmasked full-lane stores.
    n128 = _round_up(N, 128)
    tn = n128 if n128 <= 512 else 256
    # K tile: keep the whole reduction resident when it comfortably fits VMEM
    # (worst case ~3 MiB of double-buffered f32 operands at tm=256, tn=512,
    # tk=1024 — safely under the scoped-VMEM defaults on v5e/v6e/v7x),
    # otherwise tile K and accumulate in the f32 scratch.
    tk = K if K <= 1024 else 512
    return tm, tn, tk


def linear_pallas(x2d, w, b):
    """y = x2d @ w + b  (x2d: (M, K), w: (K, N), b: (N,)) via a Pallas matmul.

    Arbitrary (ragged) M/K/N are handled by zero-padding up to the tile grid
    and slicing the padding off afterwards.
    """
    M, K = x2d.shape
    Kw, N = w.shape
    assert K == Kw, (K, Kw)

    tm, tn, tk = _choose_tiles(M, K, N)
    Mp, Kp, Np = _round_up(M, tm), _round_up(K, tk), _round_up(N, tn)

    # Zero-pad: padded rows/cols contribute nothing and are sliced off below.
    if (Mp, Kp) != (M, K):
        x2d = jnp.pad(x2d, ((0, Mp - M), (0, Kp - K)))
    if (Kp, Np) != (K, N):
        w = jnp.pad(w, ((0, Kp - K), (0, Np - N)))
    b2d = b.reshape(1, N)
    if Np != N:
        b2d = jnp.pad(b2d, ((0, 0), (0, Np - N)))

    gm, gn, gk = Mp // tm, Np // tn, Kp // tk
    out_dtype = x2d.dtype

    if gk == 1:
        # Whole-K tile: 2-D grid, no accumulator scratch, no pl.when gating.
        call = pl.pallas_call(
            _linear_kernel_fused,
            out_shape=jax.ShapeDtypeStruct((Mp, Np), out_dtype),
            grid_spec=pltpu.PrefetchScalarGridSpec(
                num_scalar_prefetch=0,
                grid=(gm, gn),
                in_specs=[
                    pl.BlockSpec((tm, tk), lambda i, j: (i, 0)),   # x tile
                    pl.BlockSpec((tk, tn), lambda i, j: (0, j)),   # W tile
                    pl.BlockSpec((1, tn), lambda i, j: (0, j)),    # bias
                ],
                out_specs=pl.BlockSpec((tm, tn), lambda i, j: (i, j)),
            ),
            compiler_params=pltpu.CompilerParams(
                dimension_semantics=("parallel", "parallel"),
            ),
        )
    else:
        # K tiled along a trailing "arbitrary" axis with a resident f32 acc.
        call = pl.pallas_call(
            _linear_kernel_acc,
            out_shape=jax.ShapeDtypeStruct((Mp, Np), out_dtype),
            grid_spec=pltpu.PrefetchScalarGridSpec(
                num_scalar_prefetch=0,
                grid=(gm, gn, gk),
                in_specs=[
                    pl.BlockSpec((tm, tk), lambda i, j, k: (i, k)),   # x tile
                    pl.BlockSpec((tk, tn), lambda i, j, k: (k, j)),   # W tile
                    pl.BlockSpec((1, tn), lambda i, j, k: (0, j)),    # bias
                ],
                out_specs=pl.BlockSpec((tm, tn), lambda i, j, k: (i, j)),
                scratch_shapes=[pltpu.VMEM((tm, tn), jnp.float32)],
            ),
            compiler_params=pltpu.CompilerParams(
                dimension_semantics=("parallel", "parallel", "arbitrary"),
            ),
        )

    out = call(x2d, w, b2d)

    if (Mp, Np) != (M, N):
        out = out[:M, :N]
    return out


# ----------------------------- dispatch glue ---------------------------------
# Below this many multiply-accumulates the pallas_call fixed overhead dominates;
# let XLA's fused matmul handle tiny problems.
_PALLAS_MIN_MACS = 1 << 20


def _linear(x2d, w, b, use_pallas=None):
    if use_pallas is None:
        M, K = x2d.shape
        N = w.shape[1]
        use_pallas = (M * K * N) >= _PALLAS_MIN_MACS
    if use_pallas:
        return linear_pallas(x2d, w, b)
    return x2d @ w + b


# -------------------------- TimeDistributed wrapper --------------------------
def time_distributed_linear(x, w, b, *, batch_first=False, use_pallas=None):
    """Reproduces TimeDistributed(nn.Linear(K, N), batch_first).forward(x).

    `w` is the PyTorch Linear weight pre-transposed to (in_features, out_features).
    """
    if x.ndim <= 2:
        if x.ndim == 1:
            return _linear(x[None, :], w, b, use_pallas)[0]
        return _linear(x, w, b, use_pallas)
    # x.contiguous().view(-1, x.size(-1))
    x_reshape = x.reshape(-1, x.shape[-1])
    y = _linear(x_reshape, w, b, use_pallas)
    if batch_first:
        # y.contiguous().view(x.size(0), -1, y.size(-1))
        return y.reshape(x.shape[0], -1, y.shape[-1])
    # y.view(-1, x.size(1), y.size(-1))
    return y.reshape(-1, x.shape[1], y.shape[-1])


# ---------------------------------- main --------------------------------------
if __name__ == "__main__":
    key = jax.random.PRNGKey(0)
    kx, kw, kb, kx2, kx3 = jax.random.split(key, 5)

    # --- small demo shapes (canonical TimeDistributed(Linear) use) -----------
    B, T, IN_F, OUT_F = 2, 8, 32, 64
    # PyTorch weight is (OUT_F, IN_F); we store the transpose (IN_F, OUT_F).
    w = jax.random.normal(kw, (IN_F, OUT_F), dtype=jnp.float32) * 0.1
    b = jax.random.normal(kb, (OUT_F,), dtype=jnp.float32) * 0.1
    x = jax.random.normal(kx, (B, T, IN_F), dtype=jnp.float32)

    # Force the Pallas path so the kernel itself is exercised at these shapes
    # (the auto-dispatch would route such a tiny matmul to XLA's fused matmul).
    y = jax.block_until_ready(
        time_distributed_linear(x, w, b, batch_first=True, use_pallas=True))
    y_ref = (x.reshape(-1, IN_F) @ w + b).reshape(B, -1, OUT_F)
    assert y.shape == (B, T, OUT_F)
    assert jnp.allclose(y, y_ref, atol=1e-5, rtol=1e-5), "batch_first mismatch"

    # batch_first=False branch (PyTorch default) — same data, same view logic.
    y_nf = jax.block_until_ready(
        time_distributed_linear(x, w, b, batch_first=False, use_pallas=True))
    assert jnp.allclose(y_nf, y_ref.reshape(-1, T, OUT_F), atol=1e-5, rtol=1e-5)

    # <=2-D passthrough + auto dispatch (tiny problem -> XLA matmul path).
    x2 = x[0]                               # (T, IN_F)
    y2 = jax.block_until_ready(time_distributed_linear(x2, w, b))
    assert jnp.allclose(y2, x2 @ w + b, atol=1e-5, rtol=1e-5)

    # --- ragged, multi-tile shape exercising padding + the M grid axis -------
    B2, T2, IN2, OUT2 = 4, 160, 96, 200     # M = 640 (not a tile multiple)
    kw2, kb2 = jax.random.split(kw)
    w2 = jax.random.normal(kw2, (IN2, OUT2), dtype=jnp.float32) * 0.05
    b2 = jax.random.normal(kb2, (OUT2,), dtype=jnp.float32) * 0.05
    xb = jax.random.normal(kx2, (B2, T2, IN2), dtype=jnp.float32)
    yb = jax.block_until_ready(
        time_distributed_linear(xb, w2, b2, batch_first=True, use_pallas=True))
    yb_ref = (xb.reshape(-1, IN2) @ w2 + b2).reshape(B2, -1, OUT2)
    assert yb.shape == (B2, T2, OUT2)
    assert jnp.allclose(yb, yb_ref, atol=1e-4, rtol=1e-4), "ragged/multi-tile mismatch"

    # --- large-K shape exercising the 3-D grid + f32 accumulator path --------
    B3, T3, IN3, OUT3 = 2, 128, 1536, 256   # K tiled (tk=512, gk=3)
    kw3, kb3 = jax.random.split(kw2)
    w3 = jax.random.normal(kw3, (IN3, OUT3), dtype=jnp.float32) * 0.02
    b3 = jax.random.normal(kb3, (OUT3,), dtype=jnp.float32) * 0.02
    xc = jax.random.normal(kx3, (B3, T3, IN3), dtype=jnp.float32)
    yc = jax.block_until_ready(
        time_distributed_linear(xc, w3, b3, batch_first=True, use_pallas=True))
    yc_ref = (xc.reshape(-1, IN3) @ w3 + b3).reshape(B3, -1, OUT3)
    assert yc.shape == (B3, T3, OUT3)
    assert jnp.allclose(yc, yc_ref, atol=1e-3, rtol=1e-3), "K-tiled accumulator mismatch"

    print("KERNEL_OK")
</pallas_src>

<mosaic_0001>
module attributes {stable_mosaic.version = 11 : i64} {
  func.func @_linear_kernel_fused(%arg0: i32, %arg1: i32, %arg2: memref<16x32xf32, #tpu.memory_space<vmem>>, %arg3: memref<32x128xf32, #tpu.memory_space<vmem>>, %arg4: memref<1x128xf32, #tpu.memory_space<vmem>>, %arg5: memref<16x128xf32, #tpu.memory_space<vmem>>) attributes {dimension_semantics = [#tpu.dimension_semantics<parallel>, #tpu.dimension_semantics<parallel>], iteration_bounds = array<i64: 1, 1>, scalar_prefetch = 0 : i64, scratch_operands = 0 : i64, tpu.core_type = #tpu.core_type<tc>, window_params = [{transform_indices = @transform_0, window_bounds = array<i64: 16, 32>}, {transform_indices = @transform_1, window_bounds = array<i64: 32, 128>}, {transform_indices = @transform_2, window_bounds = array<i64: 1, 128>}, {transform_indices = @transform_3, window_bounds = array<i64: 16, 128>}]} {
    %c0 = arith.constant 0 : index
    %c0_0 = arith.constant 0 : index
    %0 = vector.load %arg2[%c0, %c0_0] : memref<16x32xf32, #tpu.memory_space<vmem>>, vector<16x32xf32>
    %c0_1 = arith.constant 0 : index
    %c0_2 = arith.constant 0 : index
    %1 = vector.load %arg3[%c0_1, %c0_2] : memref<32x128xf32, #tpu.memory_space<vmem>>, vector<32x128xf32>
    %cst = arith.constant dense<0.000000e+00> : vector<16x128xf32>
    %2 = tpu.matmul %0, %1, %cst {dimension_numbers = #tpu.dot_dimension_numbers<[1], [0], [0], [1], [0, 0, 1, 1], [], []>} : vector<16x32xf32>, vector<32x128xf32>, vector<16x128xf32> -> vector<16x128xf32>
    %c0_3 = arith.constant 0 : index
    %c0_4 = arith.constant 0 : index
    %3 = vector.load %arg4[%c0_3, %c0_4] : memref<1x128xf32, #tpu.memory_space<vmem>>, vector<1x128xf32>
    %4 = vector.broadcast %3 : vector<1x128xf32> to vector<16x128xf32>
    %5 = arith.addf %2, %4 : vector<16x128xf32>
    %c0_5 = arith.constant 0 : index
    %c0_6 = arith.constant 0 : index
    %6 = vector.load %arg5[%c0_5, %c0_6] : memref<16x128xf32, #tpu.memory_space<vmem>>, vector<16x128xf32>
    tpu.vector_store %arg5[%c0_5, %c0_6], %5 {strides = array<i32>} : memref<16x128xf32, #tpu.memory_space<vmem>>, vector<16x128xf32>,
    return
  }
  func.func @transform_0(%arg0: i32, %arg1: i32) -> (i32, i32) {
    %c0_i32 = arith.constant 0 : i32
    %c0_i32_0 = arith.constant 0 : i32
    return %arg0, %c0_i32 : i32, i32
  }
  func.func @transform_1(%arg0: i32, %arg1: i32) -> (i32, i32) {
    %c0_i32 = arith.constant 0 : i32
    %c0_i32_0 = arith.constant 0 : i32
    return %c0_i32, %arg1 : i32, i32
  }
  func.func @transform_2(%arg0: i32, %arg1: i32) -> (i32, i32) {
    %c0_i32 = arith.constant 0 : i32
    %c0_i32_0 = arith.constant 0 : i32
    return %c0_i32, %arg1 : i32, i32
  }
  func.func @transform_3(%arg0: i32, %arg1: i32) -> (i32, i32) {
    %c0_i32 = arith.constant 0 : i32
    return %arg0, %arg1 : i32, i32
  }
}

</mosaic_0001>

<bundles_post_ra>
// kernel: tpu_custom_call.1
= control target key start
LH: loop header
LB: loop body
LE: loop exit
PB: predicated region body
PF: predicated region fallthrough
CT: control target
= control target key end

     0   :  { %8 = vsyncpa [#allocation3], 0  ;;  %s336_s0 = inlined_call_operand.hbm [shape: f32[16,32], index: 0, kind: input, shape index: {}]   ;;  %s337_s1 = inlined_call_operand.hbm [shape: f32[32,128], index: 1, kind: input, shape index: {}]   ;;  %s338_s2 = inlined_call_operand.vmem [shape: f32[1,128], index: 2, kind: input, shape index: {}]   ;;  %s339_s3 = inlined_call_operand.hbm [shape: f32[16,128], index: 3, kind: output, shape index: {}]  }
   0x1   :  { %9 = vsyncpa [#allocation6], 0 }
   0x2   :  { %10 = vsyncpa [#allocation4], 0  ;;  %s263_s12 = smov [#allocation2]   ;;  %s191_s16 = scalar_lea.hbm %s336_s0, 256 }
   0x3   :  { %s16_s13 = sshll.u32 %s263_s12, 4  ;;  %p192_p0 = scmp.ne.s32.totalorder %s336_s0, %s191_s16  ;;  %s17_s13 = int_to_ptr.vmem [resolvable:$true] %s16_s13 }
   0x4   :  { %p195_p1 = scmp.lt.u32.totalorder %s191_s16, %s336_s0 }
   0x6   :  { %p197_p2 = pnand %p195_p1, %p192_p0 }
   0x8   :  { %200 = shalt.err (!%p197_p2)
}
   0x9   :  { %s201_s21 = scalar_lea.vmem %s17_s13, 256  ;;  %p206_p4 = scmp.lt.s32.totalorder %s17_s13, %s17_s13 }
   0xa   :  { %p202_p3 = scmp.ne.s32.totalorder %s17_s13, %s201_s21  ;;  %p207_p5 = scmp.lt.s32.totalorder %s201_s21, %s201_s21 }
   0xc   :  { %p208_p6 = por %p207_p5, %p206_p4 }
   0xe   :  { %p209_p7 = pnand %p208_p6, %p202_p3 }
  0x10   :  { %212 = shalt.err (!%p209_p7)
}
  0x11   :  { %s264_s22 = smov 128   ;;  %s265_s23 = smov 8  }
  0x12   :  { %22 = dma.hbm_to_vmem [thread:$0]  %s336_s0, 256, %s17_s13, [#allocation3], %s264_s22, %s264_s22, %s265_s23  }
  0x13   :  { %s266_s26 = smov [#allocation5]   ;;  %s213_s30 = scalar_lea.hbm %s337_s1, 512 }
  0x14   :  { %s28_s27 = sshll.u32 %s266_s26, 4  ;;  %p214_p8 = scmp.ne.s32.totalorder %s337_s1, %s213_s30  ;;  %s29_s27 = int_to_ptr.vmem [resolvable:$true] %s28_s27 }
  0x15   :  { %p217_p9 = scmp.lt.u32.totalorder %s213_s30, %s337_s1 }
  0x17   :  { %p219_p10 = pnand %p217_p9, %p214_p8 }
  0x19   :  { %222 = shalt.err (!%p219_p10)
}
  0x1a   :  { %s223_s8 = scalar_lea.vmem %s29_s27, 512  ;;  %p228_p12 = scmp.lt.s32.totalorder %s29_s27, %s29_s27 }
  0x1b   :  { %p224_p11 = scmp.ne.s32.totalorder %s29_s27, %s223_s8  ;;  %p229_p13 = scmp.lt.s32.totalorder %s223_s8, %s223_s8 }
  0x1d   :  { %p230_p0 = por %p229_p13, %p228_p12 }
  0x1f   :  { %p231_p1 = pnand %p230_p0, %p224_p11 }
  0x21   :  { %234 = shalt.err (!%p231_p1)
}
  0x22   :  { %34 = dma.hbm_to_vmem [thread:$0]  %s337_s1, 512, %s29_s27, [#allocation6], %s264_s22, %s264_s22, %s265_s23  }
  0x23   :  { %257 = dma.done.wait [#allocation3], 256  }
  0x24   :  { %258 = vsyncadd [#allocation3], 4294967040 }
  0x25   :  { %259 = dma.done.wait [#allocation6], 512  }
  0x26   :  { %260 = vsyncadd [#allocation6], 4294966784  ;;  %vm56_vm0 = vcmask 261120   ;;  %v45_v0 = vld [vmem:[#allocation5] sm:$0xff]  ;;  %v46_v1 = vld [vmem:[#allocation5 + $0x8] sm:$0xff]  ;;  %s267_s11 = smov [#allocation7]  }
  0x27   :  { %v47_v2 = vld [vmem:[#allocation5 + $0x10] sm:$0xff]  ;;  %v178_v3 = vpack.c.bf16 %v46_v1, %v45_v0  ;;  %v48_v4 = vld [vmem:[#allocation5 + $0x18] sm:$0xff]  ;;  %s145_s12 = sshll.u32 %s267_s11, 4  ;;  %s146_s12 = int_to_ptr.vmem [resolvable:$true] %s145_s12 }
  0x28   :  { %v43_v5 = vld [vmem:[#allocation2] sm:$0xff]  ;;  %v182_v6 = vpack.c.bf16 %v48_v4, %v47_v2  ;;  %v44_v7 = vld [vmem:[#allocation2 + $0x8] sm:$0xff]  ;;  %s235_s13 = scalar_lea.vmem %s146_s12, 256  ;;  %p240_p3 = scmp.lt.s32.totalorder %s146_s12, %s146_s12 }
  0x29   :  { %175 = vmatprep.mubr.msk.f32.mxu0 %vm56_vm0, %v43_v5  ;;  %179 = vmatprep.subr.bf16.mxu0 %v178_v3  ;;  %v158_v8 = vld [vmem:[%s338_s2] ss:$0 sm:$0xff]  ;;  %p236_p2 = scmp.ne.s32.totalorder %s146_s12, %s235_s13  ;;  %p241_p4 = scmp.lt.s32.totalorder %s235_s13, %s235_s13 }
  0x2a   :  { %181 = vmatpush3.bf16.msra.mxu0 %v178_v3 }
  0x2b   :  { %183 = vmatprep.subr.bf16.mxu0 %v182_v6  ;;  %p242_p5 = por %p241_p4, %p240_p3 }
  0x2d   :  { %p243_p6 = pnand %p242_p5, %p236_p2 }
  0x2e   :  { %185 = vmatpush3.bf16.msra.mxu0 %v182_v6 }
  0x31   :  { %176 = vmatmul.mubr.msk.f32.vlgmr.msra.gmra.mrb[0].mxu0 %vm56_vm0, %v44_v7 }
 0x104   :  { %v177_v9 = vpop.f32.mrb[0].mxu0 }
 0x105   :  { %v135_v10 = vadd.f32 %v177_v9, %v158_v8  ;;  %v129_v11 = vpop.f32.mrb[1].mxu0 }
 0x106   :  { %v130_v12 = vadd.f32 %v158_v8, %v129_v11 }
 0x107   :  { %139 = vst [vmem:[#allocation7 + $0x8] sm:$0xff] %v135_v10 }
 0x108   :  { %138 = vst [vmem:[#allocation7] sm:$0xff] %v130_v12 }
 0x109   :  { %246 = shalt.err (!%p243_p6)
}
 0x10a   :  { %s247_s2 = scalar_lea.hbm %s339_s3, 256 }
 0x10b   :  { %p248_p7 = scmp.ne.s32.totalorder %s339_s3, %s247_s2  ;;  %p251_p8 = scmp.lt.u32.totalorder %s247_s2, %s339_s3 }
 0x10d   :  { %p253_p9 = pnand %p251_p8, %p248_p7 }
 0x10f   :  { %256 = shalt.err (!%p253_p9)
}
 0x110   :  { %151 = dma.vmem_to_hbm [thread:$0]  %s146_s12, 256, %s339_s3, [#allocation4], %s264_s22, %s264_s22, %s265_s23  }
 0x111   :  { %261 = dma.done.wait [#allocation4], 256  }
 0x112   :  { %262 = vsyncadd [#allocation4], 4294967040 }
 0x113   :  { %155 = vsyncpa [#allocation3], 1 }
 0x114   :  { %156 = vsyncpa [#allocation6], 1 }
 0x115   :  { %157 = vsyncpa [#allocation4], 1 }

</bundles_post_ra>
